<compile_context>
chip_gen: v7x
topology: tpu7x:2x2x1
jax: 0.10.0
libtpu: 0.0.40
codegen_flags: <defaults>
</compile_context>

<pallas_src>
import functools
from typing import NamedTuple

import jax
import jax.numpy as jnp
from jax.experimental import pallas as pl
from jax.experimental.pallas import tpu as pltpu


def _round_up(v: int, m: int) -> int:
    return (v + m - 1) // m * m


def _lane(c: int) -> int:
    return max(_round_up(c, 128), 128)


class ChebPlan(NamedTuple):
    n: int
    f_in: int
    f_out: int
    k: int
    tm: int            # row tile
    n_pad: int         # padded node count (multiple of tm)
    n_rt: int          # number of row tiles
    lhat_resident: bool
    vmem_limit: int


def _vmem_limit_bytes() -> int:
    """Generation-gated VMEM request with headroom for compiler scratch."""
    cap = 64 * 1024 * 1024                    # conservative fallback (v7x physical)
    try:
        info = pltpu.get_tpu_info()
        cap = int(getattr(info, "vmem_capacity_bytes", cap)) or cap
    except Exception:
        pass
    # v7x (64 MiB) -> 48 MiB ; v5e/v6e (128 MiB) -> 96 MiB
    return min((cap * 3) // 4, 112 * 1024 * 1024)


def make_cheb_plan(n, f_in, f_out, k, row_tile=None, lhat_resident=None):
    """Pick row tile, padding and L_hat residency from the per-chip VMEM budget."""
    vmem_limit = _vmem_limit_bytes()
    budget = vmem_limit - (8 << 20)           # headroom: out blocks, params, pipeline

    def fixed_bytes(n_pad):
        b = n_pad * _lane(k * f_in) * 2                     # T scratch (bf16)
        b += n_pad * _lane(f_in) * 2                        # resident x block (bf16)
        b += _round_up(k * f_in, 16) * _lane(f_out) * 2     # resident W (bf16)
        b += 64 * 1024                                      # bias/gamma/beta/stats/...
        return b

    if row_tile is None:
        row_tile = 512            # large blocks amortize the ~0.35 us per-step cost
    tm = min(max(16, _round_up(row_tile, 16)), _round_up(n, 16))
    # Shrink tm until the double-buffered streamed L_hat row block fits VMEM.
    while tm > 16:
        n_pad = _round_up(n, tm)
        if fixed_bytes(n_pad) + 2 * tm * _lane(n_pad) * 2 <= budget:
            break
        tm = max(16, _round_up(tm // 2, 16))
    n_pad = _round_up(n, tm)
    n_rt = n_pad // tm

    if lhat_resident is None:
        # Keep all of L_hat VMEM-resident when it fits (saves (K-2)/(K-1) of the
        # N^2 HBM traffic; typical for small graphs on v5e/v6e 128 MiB VMEM).
        lhat_resident = fixed_bytes(n_pad) + n_pad * _lane(n_pad) * 2 <= budget
    return ChebPlan(n, f_in, f_out, k, tm, n_pad, n_rt, bool(lhat_resident),
                    vmem_limit)


def prepare_lhat(lhat, plan: ChebPlan):
    """Pad + bf16-cast L_hat ONCE per graph (hoisted out of the per-call path)."""
    n, n_pad = plan.n, plan.n_pad
    return jnp.zeros((n_pad, n_pad), jnp.bfloat16).at[:n, :n].set(
        lhat.astype(jnp.bfloat16))


def _cheb_layer_kernel(lhat_ref, x_ref, w_ref, b_ref, g_ref, be_ref,
                       o_ref, t_ref, sum_ref, ssq_ref, *,
                       k: int, n_valid: int, tm: int, f_in: int,
                       alpha: float, eps: float, lhat_resident: bool):
    """Fused ChebConv('sym') + BatchNorm1d(train batch stats) + LeakyReLU.

    Grid = (k + 1 phases, row tiles); both axes "arbitrary" (scratch carries
    state across tiles and phases).
      phases 0..k-2 : Chebyshev recurrence (T_{p+1} rows for tile i)
      phase  k-1    : projection acc = T_rows @ W + b and global BN statistics
      phase  k      : BN finalize + LeakyReLU, tiled output write

    lhat_ref : [tm, Np] (streamed) or [Np, Np] (resident) bf16 scaled Laplacian
    x_ref    : [Np, F_in]       bf16 node features (zero-padded rows), resident
    w_ref    : [K*F_in, F_out]  bf16 flattened Chebyshev weights, resident
    b/g/be_ref : [1, F_out]     f32
    o_ref    : [tm, F_out]      f32 output tile (written in the finalize phase)
    t_ref    : VMEM [Np, K*F_in] bf16 scratch: T_0..T_{K-1} side by side
    sum/ssq_ref : VMEM [1, F_out] f32 running batch sum / sum-of-squares
    """
    p = pl.program_id(0)
    i = pl.program_id(1)
    row0 = pl.multiple_of(i * tm, tm)
    proj_phase = k - 1
    fin_phase = k

    # One-time init: T_0 = x (already padded, bf16), zero the BN accumulators.
    @pl.when((p == 0) & (i == 0))
    def _():
        t_ref[:, 0:f_in] = x_ref[...]
        sum_ref[...] = jnp.zeros_like(sum_ref)
        ssq_ref[...] = jnp.zeros_like(ssq_ref)

    # Chebyshev recurrence, statically unrolled over the order so every lane-axis
    # slice of the [Np, K*F_in] scratch is static and no dead work (T_{-1} load,
    # multiply-by-zero) is emitted for the first step.
    if k > 1:
        def lhat_rows():
            if lhat_resident:
                return lhat_ref[pl.ds(row0, tm), :]     # rows of resident [Np, Np]
            return lhat_ref[...]                        # streamed [tm, Np] block

        for kk in range(1, k):
            @pl.when(p == kk - 1)
            def _(kk=kk):
                t_cur = t_ref[:, (kk - 1) * f_in:kk * f_in]        # [Np, F_in] bf16
                lt = jnp.dot(lhat_rows(), t_cur,
                             preferred_element_type=jnp.float32)   # [tm, F_in] f32
                if kk == 1:
                    t_new = lt                                     # T_1 = L x
                else:                                              # T_k = 2 L T_{k-1} - T_{k-2}
                    t_prev = t_ref[pl.ds(row0, tm),
                                   (kk - 2) * f_in:(kk - 1) * f_in]
                    t_new = 2.0 * lt - t_prev.astype(jnp.float32)
                t_ref[pl.ds(row0, tm),
                      kk * f_in:(kk + 1) * f_in] = t_new.astype(t_ref.dtype)

    # Projection (single folded matmul over the K*F_in contraction) + global
    # batch statistics, accumulated per row tile with padded rows masked out.
    @pl.when(p == proj_phase)
    def _():
        t_rows = t_ref[pl.ds(row0, tm), :]                         # [tm, K*F_in]
        acc = jnp.dot(t_rows, w_ref[...],
                      preferred_element_type=jnp.float32) + b_ref[...]
        rows = row0 + jax.lax.broadcasted_iota(jnp.int32, (tm, 1), 0)
        accm = jnp.where(rows < n_valid, acc, 0.0)
        sum_ref[...] += jnp.sum(accm, axis=0, keepdims=True)
        ssq_ref[...] += jnp.sum(accm * accm, axis=0, keepdims=True)

    # Finalize: exact global BatchNorm (biased variance over the n valid rows)
    # + LeakyReLU.  The tiny per-tile projection is recomputed instead of
    # keeping an O(N)-resident activation buffer.
    @pl.when(p == fin_phase)
    def _():
        inv_n = 1.0 / n_valid
        mean = sum_ref[...] * inv_n
        var = jnp.maximum(ssq_ref[...] * inv_n - mean * mean, 0.0)
        t_rows = t_ref[pl.ds(row0, tm), :]
        acc = jnp.dot(t_rows, w_ref[...],
                      preferred_element_type=jnp.float32) + b_ref[...]
        y = (acc - mean) * jax.lax.rsqrt(var + eps)
        y = y * g_ref[...] + be_ref[...]
        o_ref[...] = jnp.where(y > 0, y, alpha * y).astype(o_ref.dtype)


def cheb_conv_layer(x, lhat_prep, weight, bias, gamma, beta, plan: ChebPlan, *,
                    alpha: float = 0.01, eps: float = 1e-5):
    """x: [N, F_in] f32, lhat_prep: padded bf16 [Np, Np] from prepare_lhat(),
    weight: [K, F_in, F_out], bias/gamma/beta: [F_out]."""
    n, f_in = x.shape
    k, _, f_out = weight.shape
    assert (n, f_in, f_out, k) == (plan.n, plan.f_in, plan.f_out, plan.k)
    tm, n_pad, n_rt = plan.tm, plan.n_pad, plan.n_rt
    resident = plan.lhat_resident

    x_p = jnp.zeros((n_pad, f_in), jnp.bfloat16).at[:n, :].set(
        x.astype(jnp.bfloat16))
    w_flat = weight.reshape(k * f_in, f_out).astype(jnp.bfloat16)
    b2 = bias.reshape(1, f_out).astype(jnp.float32)
    g2 = gamma.reshape(1, f_out).astype(jnp.float32)
    be2 = beta.reshape(1, f_out).astype(jnp.float32)

    n_cheb = k - 1
    n_phases = k + 1          # (k-1) recurrence + projection/stats + finalize
    fin_phase = k

    if k == 1:
        # No recurrence: never stream L_hat at all (raw HBM ref, never touched).
        lhat_spec = pl.BlockSpec(memory_space=pl.ANY)
    elif resident:
        lhat_spec = pl.BlockSpec((n_pad, n_pad), lambda p, i: (0, 0))
    else:
        # Pin the row block to the last-fetched one during the two epilogue
        # phases so no L_hat DMA is issued (or wasted) there.
        def lhat_index(p, i, n_cheb=n_cheb, last=n_rt - 1):
            return (jnp.where(p < n_cheb, i, jnp.int32(last)), 0)
        lhat_spec = pl.BlockSpec((tm, n_pad), lhat_index)

    def out_index(p, i, fin=fin_phase):
        # Output blocks only change (and write back) during the finalize phase.
        return (jnp.where(p == fin, i, jnp.int32(0)), 0)

    kernel = functools.partial(
        _cheb_layer_kernel, k=k, n_valid=n, tm=tm, f_in=f_in,
        alpha=alpha, eps=eps, lhat_resident=resident)

    out = pl.pallas_call(
        kernel,
        out_shape=jax.ShapeDtypeStruct((n_pad, f_out), jnp.float32),
        grid_spec=pltpu.PrefetchScalarGridSpec(
            num_scalar_prefetch=0,
            grid=(n_phases, n_rt),
            in_specs=[
                lhat_spec,                                             # L_hat
                pl.BlockSpec((n_pad, f_in), lambda p, i: (0, 0)),      # x (resident)
                pl.BlockSpec((k * f_in, f_out), lambda p, i: (0, 0)),  # W_flat
                pl.BlockSpec((1, f_out), lambda p, i: (0, 0)),         # bias
                pl.BlockSpec((1, f_out), lambda p, i: (0, 0)),         # gamma
                pl.BlockSpec((1, f_out), lambda p, i: (0, 0)),         # beta
            ],
            out_specs=pl.BlockSpec((tm, f_out), out_index),
            scratch_shapes=[
                pltpu.VMEM((n_pad, k * f_in), jnp.bfloat16),  # T_0..T_{K-1}
                pltpu.VMEM((1, f_out), jnp.float32),          # batch sum
                pltpu.VMEM((1, f_out), jnp.float32),          # batch sum of squares
            ],
        ),
        compiler_params=pltpu.CompilerParams(
            dimension_semantics=("arbitrary", "arbitrary"),
            vmem_limit_bytes=plan.vmem_limit,
        ),
    )(lhat_prep, x_p, w_flat, b2, g2, be2)
    return out[:n]


def build_scaled_laplacian(edge_index, num_nodes, lambda_max=2.0):
    """Dense L_hat = (2/lambda_max) * (I - D^{-1/2} A D^{-1/2}) - I (sym norm)."""
    src, dst = edge_index[0], edge_index[1]
    adj = jnp.zeros((num_nodes, num_nodes), jnp.float32)
    adj = adj.at[src, dst].set(1.0)
    adj = adj.at[jnp.arange(num_nodes), jnp.arange(num_nodes)].set(0.0)
    deg = jnp.sum(adj, axis=1)
    dinv = jnp.where(deg > 0, jax.lax.rsqrt(deg), 0.0)
    anorm = adj * dinv[:, None] * dinv[None, :]
    eye = jnp.eye(num_nodes, dtype=jnp.float32)
    return (2.0 / lambda_max) * (eye - anorm) - eye


def reference(x, lhat, weight, bias, gamma, beta, alpha=0.01, eps=1e-5):
    k = weight.shape[0]
    t_prev = x
    out = x @ weight[0]
    if k > 1:
        t_cur = lhat @ x
        out = out + t_cur @ weight[1]
        for kk in range(2, k):
            t_new = 2.0 * (lhat @ t_cur) - t_prev
            out = out + t_new @ weight[kk]
            t_prev, t_cur = t_cur, t_new
    out = out + bias[None, :]
    mean = out.mean(axis=0, keepdims=True)
    var = ((out - mean) ** 2).mean(axis=0, keepdims=True)
    y = (out - mean) / jnp.sqrt(var + eps) * gamma[None, :] + beta[None, :]
    return jnp.where(y > 0, y, alpha * y)


if __name__ == "__main__":
    key = jax.random.PRNGKey(0)

    N = 80          # nodes (not a multiple of the row tile -> exercises padding/masking)
    F_IN = 8        # n_dims_in
    F_OUT = 16      # n_dims_out
    K = 3           # Chebyshev order
    ALPHA = 0.01    # LeakyReLU slope
    ROW_TILE = 32   # small tile so the demo exercises multiple grid row tiles

    k_x, k_a, k_w, k_b, k_g, k_be = jax.random.split(key, 6)

    x = jax.random.normal(k_x, (N, F_IN), jnp.float32)

    # Deterministic random undirected graph -> edge_index [2, E]
    upper = jax.random.bernoulli(k_a, 0.1, (N, N))
    adj_sym = jnp.logical_or(jnp.triu(upper, 1), jnp.triu(upper, 1).T)
    src, dst = jnp.nonzero(adj_sym, size=N * N, fill_value=0)
    edge_index = jnp.stack([src, dst], axis=0)
    lhat = build_scaled_laplacian(edge_index, N)

    # Parameters (non-zero bias exercises the padded-row masking in the BN stats).
    weight = jax.random.normal(k_w, (K, F_IN, F_OUT), jnp.float32) * 0.1
    bias = 0.1 * jax.random.normal(k_b, (F_OUT,), jnp.float32)
    gamma = 1.0 + 0.1 * jax.random.normal(k_g, (F_OUT,), jnp.float32)
    beta = 0.1 * jax.random.normal(k_be, (F_OUT,), jnp.float32)

    # Reference in f32 with the same bf16-rounded operands the kernel streams;
    # the remaining difference is the in-kernel bf16 storage of the T states.
    lhat_q = lhat.astype(jnp.bfloat16).astype(jnp.float32)
    x_q = x.astype(jnp.bfloat16).astype(jnp.float32)
    w_q = weight.astype(jnp.bfloat16).astype(jnp.float32)
    ref = reference(x_q, lhat_q, w_q, bias, gamma, beta, alpha=ALPHA)

    # Exercise both L_hat paths: streamed row blocks and fully VMEM-resident.
    for resident in (False, True):
        plan = make_cheb_plan(N, F_IN, F_OUT, K, row_tile=ROW_TILE,
                              lhat_resident=resident)
        lhat_prep = prepare_lhat(lhat, plan)          # once per graph, reused
        out = cheb_conv_layer(x, lhat_prep, weight, bias, gamma, beta, plan,
                              alpha=ALPHA)
        out = jax.block_until_ready(out)
        assert out.shape == (N, F_OUT)
        assert jnp.allclose(out, ref, atol=2e-2, rtol=2e-2), (
            f"mismatch vs reference (lhat_resident={resident})")

    print("KERNEL_OK")
</pallas_src>

<mosaic_0001>
module attributes {stable_mosaic.version = 11 : i64} {
  func.func @_cheb_layer_kernel(%arg0: i32, %arg1: i32, %arg2: memref<32x96xbf16, #tpu.memory_space<vmem>>, %arg3: memref<96x8xbf16, #tpu.memory_space<vmem>>, %arg4: memref<24x16xbf16, #tpu.memory_space<vmem>>, %arg5: memref<1x16xf32, #tpu.memory_space<vmem>>, %arg6: memref<1x16xf32, #tpu.memory_space<vmem>>, %arg7: memref<1x16xf32, #tpu.memory_space<vmem>>, %arg8: memref<32x16xf32, #tpu.memory_space<vmem>>, %arg9: memref<96x24xbf16, #tpu.memory_space<vmem>>, %arg10: memref<1x16xf32, #tpu.memory_space<vmem>>, %arg11: memref<1x16xf32, #tpu.memory_space<vmem>>) attributes {dimension_semantics = [#tpu.dimension_semantics<arbitrary>, #tpu.dimension_semantics<arbitrary>], iteration_bounds = array<i64: 4, 3>, scalar_prefetch = 0 : i64, scratch_operands = 3 : i64, tpu.core_type = #tpu.core_type<tc>, window_params = [{transform_indices = @transform_0, window_bounds = array<i64: 32, 96>}, {pipeline_mode = #tpu.pipeline_mode<synchronous>, transform_indices = @transform_1, window_bounds = array<i64: 96, 8>}, {pipeline_mode = #tpu.pipeline_mode<synchronous>, transform_indices = @transform_2, window_bounds = array<i64: 24, 16>}, {pipeline_mode = #tpu.pipeline_mode<synchronous>, transform_indices = @transform_3, window_bounds = array<i64: 1, 16>}, {pipeline_mode = #tpu.pipeline_mode<synchronous>, transform_indices = @transform_4, window_bounds = array<i64: 1, 16>}, {pipeline_mode = #tpu.pipeline_mode<synchronous>, transform_indices = @transform_5, window_bounds = array<i64: 1, 16>}, {transform_indices = @transform_6, window_bounds = array<i64: 32, 16>}]} {
    %c32_i32 = arith.constant 32 : i32
    %0 = arith.muli %arg1, %c32_i32 : i32
    %1 = tpu.assume_multiple %0, 32 : i32
    %c0_i32 = arith.constant 0 : i32
    %2 = arith.cmpi eq, %arg0, %c0_i32 : i32
    %c0_i32_0 = arith.constant 0 : i32
    %3 = arith.cmpi eq, %arg1, %c0_i32_0 : i32
    %4 = arith.andi %2, %3 : i1
    %5 = arith.extui %4 : i1 to i32
    %c0_i32_1 = arith.constant 0 : i32
    %6 = arith.cmpi ne, %5, %c0_i32_1 : i32
    scf.if %6 {
      %c0 = arith.constant 0 : index
      %c0_7 = arith.constant 0 : index
      %19 = vector.load %arg3[%c0, %c0_7] : memref<96x8xbf16, #tpu.memory_space<vmem>>, vector<96x8xbf16>
      %c0_8 = arith.constant 0 : index
      %c0_9 = arith.constant 0 : index
      %20 = vector.load %arg9[%c0_8, %c0_9] : memref<96x24xbf16, #tpu.memory_space<vmem>>, vector<96x8xbf16>
      tpu.vector_store %arg9[%c0_8, %c0_9], %19 {strides = array<i32>} : memref<96x24xbf16, #tpu.memory_space<vmem>>, vector<96x8xbf16>,
      %cst = arith.constant 0.000000e+00 : f32
      %21 = vector.broadcast %cst : f32 to vector<1x16xf32>
      %c0_10 = arith.constant 0 : index
      %c0_11 = arith.constant 0 : index
      %22 = vector.load %arg10[%c0_10, %c0_11] : memref<1x16xf32, #tpu.memory_space<vmem>>, vector<1x16xf32>
      tpu.vector_store %arg10[%c0_10, %c0_11], %21 {strides = array<i32>} : memref<1x16xf32, #tpu.memory_space<vmem>>, vector<1x16xf32>,
      %cst_12 = arith.constant 0.000000e+00 : f32
      %23 = vector.broadcast %cst_12 : f32 to vector<1x16xf32>
      %c0_13 = arith.constant 0 : index
      %c0_14 = arith.constant 0 : index
      %24 = vector.load %arg11[%c0_13, %c0_14] : memref<1x16xf32, #tpu.memory_space<vmem>>, vector<1x16xf32>
      tpu.vector_store %arg11[%c0_13, %c0_14], %23 {strides = array<i32>} : memref<1x16xf32, #tpu.memory_space<vmem>>, vector<1x16xf32>,
    } else {
    }
    %c0_i32_2 = arith.constant 0 : i32
    %7 = arith.cmpi eq, %arg0, %c0_i32_2 : i32
    %8 = arith.extui %7 : i1 to i32
    %c0_i32_3 = arith.constant 0 : i32
    %9 = arith.cmpi ne, %8, %c0_i32_3 : i32
    scf.if %9 {
      %c0 = arith.constant 0 : index
      %c0_7 = arith.constant 0 : index
      %19 = vector.load %arg9[%c0, %c0_7] : memref<96x24xbf16, #tpu.memory_space<vmem>>, vector<96x8xbf16>
      %c0_8 = arith.constant 0 : index
      %c0_9 = arith.constant 0 : index
      %20 = vector.load %arg2[%c0_8, %c0_9] : memref<32x96xbf16, #tpu.memory_space<vmem>>, vector<32x96xbf16>
      %cst = arith.constant dense<0.000000e+00> : vector<32x8xf32>
      %21 = tpu.matmul %20, %19, %cst {dimension_numbers = #tpu.dot_dimension_numbers<[1], [0], [0], [1], [0, 0, 1, 1], [], []>} : vector<32x96xbf16>, vector<96x8xbf16>, vector<32x8xf32> -> vector<32x8xf32>
      %22 = arith.truncf %21 : vector<32x8xf32> to vector<32x8xbf16>
      %23 = arith.index_cast %1 : i32 to index
      %c8 = arith.constant 8 : index
      %24 = vector.load %arg9[%23, %c8] : memref<96x24xbf16, #tpu.memory_space<vmem>>, vector<32x8xbf16>
      tpu.vector_store %arg9[%23, %c8], %22 {strides = array<i32>} : memref<96x24xbf16, #tpu.memory_space<vmem>>, vector<32x8xbf16>,
    } else {
    }
    %c1_i32 = arith.constant 1 : i32
    %10 = arith.cmpi eq, %arg0, %c1_i32 : i32
    %11 = arith.extui %10 : i1 to i32
    %c0_i32_4 = arith.constant 0 : i32
    %12 = arith.cmpi ne, %11, %c0_i32_4 : i32
    scf.if %12 {
      %c0 = arith.constant 0 : index
      %c8 = arith.constant 8 : index
      %19 = vector.load %arg9[%c0, %c8] : memref<96x24xbf16, #tpu.memory_space<vmem>>, vector<96x8xbf16>
      %c0_7 = arith.constant 0 : index
      %c0_8 = arith.constant 0 : index
      %20 = vector.load %arg2[%c0_7, %c0_8] : memref<32x96xbf16, #tpu.memory_space<vmem>>, vector<32x96xbf16>
      %cst = arith.constant dense<0.000000e+00> : vector<32x8xf32>
      %21 = tpu.matmul %20, %19, %cst {dimension_numbers = #tpu.dot_dimension_numbers<[1], [0], [0], [1], [0, 0, 1, 1], [], []>} : vector<32x96xbf16>, vector<96x8xbf16>, vector<32x8xf32> -> vector<32x8xf32>
      %22 = arith.index_cast %1 : i32 to index
      %c0_9 = arith.constant 0 : index
      %23 = vector.load %arg9[%22, %c0_9] : memref<96x24xbf16, #tpu.memory_space<vmem>>, vector<32x8xbf16>
      %cst_10 = arith.constant 2.000000e+00 : f32
      %24 = vector.broadcast %cst_10 : f32 to vector<32x8xf32>
      %25 = arith.mulf %24, %21 : vector<32x8xf32>
      %26 = arith.extf %23 : vector<32x8xbf16> to vector<32x8xf32>
      %27 = arith.subf %25, %26 : vector<32x8xf32>
      %28 = arith.truncf %27 : vector<32x8xf32> to vector<32x8xbf16>
      %29 = arith.index_cast %1 : i32 to index
      %c16 = arith.constant 16 : index
      %30 = vector.load %arg9[%29, %c16] : memref<96x24xbf16, #tpu.memory_space<vmem>>, vector<32x8xbf16>
      tpu.vector_store %arg9[%29, %c16], %28 {strides = array<i32>} : memref<96x24xbf16, #tpu.memory_space<vmem>>, vector<32x8xbf16>,
    } else {
    }
    %c2_i32 = arith.constant 2 : i32
    %13 = arith.cmpi eq, %arg0, %c2_i32 : i32
    %14 = arith.extui %13 : i1 to i32
    %c0_i32_5 = arith.constant 0 : i32
    %15 = arith.cmpi ne, %14, %c0_i32_5 : i32
    scf.if %15 {
      %19 = arith.index_cast %1 : i32 to index
      %c0 = arith.constant 0 : index
      %20 = vector.load %arg9[%19, %c0] : memref<96x24xbf16, #tpu.memory_space<vmem>>, vector<32x24xbf16>
      %c0_7 = arith.constant 0 : index
      %c0_8 = arith.constant 0 : index
      %21 = vector.load %arg4[%c0_7, %c0_8] : memref<24x16xbf16, #tpu.memory_space<vmem>>, vector<24x16xbf16>
      %cst = arith.constant dense<0.000000e+00> : vector<32x16xf32>
      %22 = tpu.matmul %20, %21, %cst {dimension_numbers = #tpu.dot_dimension_numbers<[1], [0], [0], [1], [0, 0, 1, 1], [], []>} : vector<32x24xbf16>, vector<24x16xbf16>, vector<32x16xf32> -> vector<32x16xf32>
      %c0_9 = arith.constant 0 : index
      %c0_10 = arith.constant 0 : index
      %23 = vector.load %arg5[%c0_9, %c0_10] : memref<1x16xf32, #tpu.memory_space<vmem>>, vector<1x16xf32>
      %24 = vector.broadcast %23 : vector<1x16xf32> to vector<32x16xf32>
      %25 = arith.addf %22, %24 : vector<32x16xf32>
      %26 = tpu.iota {dimensions = array<i32: 0>} : vector<32x1xi32>
      %27 = vector.broadcast %1 : i32 to vector<32x1xi32>
      %28 = arith.addi %27, %26 : vector<32x1xi32>
      %c80_i32 = arith.constant 80 : i32
      %29 = vector.broadcast %c80_i32 : i32 to vector<32x1xi32>
      %30 = arith.cmpi slt, %28, %29 : vector<32x1xi32>
      %cst_11 = arith.constant 0.000000e+00 : f32
      %31 = vector.shape_cast %30 : vector<32x1xi1> to vector<32x1xi1>
      %32 = vector.broadcast %31 : vector<32x1xi1> to vector<32x16xi1>
      %33 = vector.broadcast %cst_11 : f32 to vector<32x16xf32>
      %34 = arith.select %32, %25, %33 : vector<32x16xi1>, vector<32x16xf32>
      %c0_12 = arith.constant 0 : index
      %c0_13 = arith.constant 0 : index
      %35 = vector.load %arg10[%c0_12, %c0_13] : memref<1x16xf32, #tpu.memory_space<vmem>>, vector<1x16xf32>
      %cst_14 = arith.constant dense<0.000000e+00> : vector<16xf32>
      %36 = vector.multi_reduction <add>, %34, %cst_14 [0] : vector<32x16xf32> to vector<16xf32>
      %37 = vector.shape_cast %36 : vector<16xf32> to vector<1x16xf32>
      %38 = arith.addf %35, %37 : vector<1x16xf32>
      %c0_15 = arith.constant 0 : index
      %c0_16 = arith.constant 0 : index
      %39 = vector.load %arg10[%c0_15, %c0_16] : memref<1x16xf32, #tpu.memory_space<vmem>>, vector<1x16xf32>
      tpu.vector_store %arg10[%c0_15, %c0_16], %38 {strides = array<i32>} : memref<1x16xf32, #tpu.memory_space<vmem>>, vector<1x16xf32>,
      %c0_17 = arith.constant 0 : index
      %c0_18 = arith.constant 0 : index
      %40 = vector.load %arg11[%c0_17, %c0_18] : memref<1x16xf32, #tpu.memory_space<vmem>>, vector<1x16xf32>
      %41 = arith.mulf %34, %34 : vector<32x16xf32>
      %cst_19 = arith.constant dense<0.000000e+00> : vector<16xf32>
      %42 = vector.multi_reduction <add>, %41, %cst_19 [0] : vector<32x16xf32> to vector<16xf32>
      %43 = vector.shape_cast %42 : vector<16xf32> to vector<1x16xf32>
      %44 = arith.addf %40, %43 : vector<1x16xf32>
      %c0_20 = arith.constant 0 : index
      %c0_21 = arith.constant 0 : index
      %45 = vector.load %arg11[%c0_20, %c0_21] : memref<1x16xf32, #tpu.memory_space<vmem>>, vector<1x16xf32>
      tpu.vector_store %arg11[%c0_20, %c0_21], %44 {strides = array<i32>} : memref<1x16xf32, #tpu.memory_space<vmem>>, vector<1x16xf32>,
    } else {
    }
    %c3_i32 = arith.constant 3 : i32
    %16 = arith.cmpi eq, %arg0, %c3_i32 : i32
    %17 = arith.extui %16 : i1 to i32
    %c0_i32_6 = arith.constant 0 : i32
    %18 = arith.cmpi ne, %17, %c0_i32_6 : i32
    scf.if %18 {
      %c0 = arith.constant 0 : index
      %c0_7 = arith.constant 0 : index
      %19 = vector.load %arg10[%c0, %c0_7] : memref<1x16xf32, #tpu.memory_space<vmem>>, vector<1x16xf32>
      %cst = arith.constant 1.250000e-02 : f32
      %20 = vector.broadcast %cst : f32 to vector<1x16xf32>
      %21 = arith.mulf %19, %20 : vector<1x16xf32>
      %c0_8 = arith.constant 0 : index
      %c0_9 = arith.constant 0 : index
      %22 = vector.load %arg11[%c0_8, %c0_9] : memref<1x16xf32, #tpu.memory_space<vmem>>, vector<1x16xf32>
      %cst_10 = arith.constant 1.250000e-02 : f32
      %23 = vector.broadcast %cst_10 : f32 to vector<1x16xf32>
      %24 = arith.mulf %22, %23 : vector<1x16xf32>
      %25 = arith.mulf %21, %21 : vector<1x16xf32>
      %26 = arith.subf %24, %25 : vector<1x16xf32>
      %cst_11 = arith.constant 0.000000e+00 : f32
      %27 = vector.broadcast %cst_11 : f32 to vector<1x16xf32>
      %28 = arith.maximumf %26, %27 : vector<1x16xf32>
      %29 = arith.index_cast %1 : i32 to index
      %c0_12 = arith.constant 0 : index
      %30 = vector.load %arg9[%29, %c0_12] : memref<96x24xbf16, #tpu.memory_space<vmem>>, vector<32x24xbf16>
      %c0_13 = arith.constant 0 : index
      %c0_14 = arith.constant 0 : index
      %31 = vector.load %arg4[%c0_13, %c0_14] : memref<24x16xbf16, #tpu.memory_space<vmem>>, vector<24x16xbf16>
      %cst_15 = arith.constant dense<0.000000e+00> : vector<32x16xf32>
      %32 = tpu.matmul %30, %31, %cst_15 {dimension_numbers = #tpu.dot_dimension_numbers<[1], [0], [0], [1], [0, 0, 1, 1], [], []>} : vector<32x24xbf16>, vector<24x16xbf16>, vector<32x16xf32> -> vector<32x16xf32>
      %c0_16 = arith.constant 0 : index
      %c0_17 = arith.constant 0 : index
      %33 = vector.load %arg5[%c0_16, %c0_17] : memref<1x16xf32, #tpu.memory_space<vmem>>, vector<1x16xf32>
      %34 = vector.broadcast %33 : vector<1x16xf32> to vector<32x16xf32>
      %35 = arith.addf %32, %34 : vector<32x16xf32>
      %36 = vector.broadcast %21 : vector<1x16xf32> to vector<32x16xf32>
      %37 = arith.subf %35, %36 : vector<32x16xf32>
      %cst_18 = arith.constant 9.99999974E-6 : f32
      %38 = vector.broadcast %cst_18 : f32 to vector<1x16xf32>
      %39 = arith.addf %28, %38 : vector<1x16xf32>
      %40 = math.rsqrt %39 : vector<1x16xf32>
      %41 = vector.broadcast %40 : vector<1x16xf32> to vector<32x16xf32>
      %42 = arith.mulf %37, %41 : vector<32x16xf32>
      %c0_19 = arith.constant 0 : index
      %c0_20 = arith.constant 0 : index
      %43 = vector.load %arg6[%c0_19, %c0_20] : memref<1x16xf32, #tpu.memory_space<vmem>>, vector<1x16xf32>
      %44 = vector.broadcast %43 : vector<1x16xf32> to vector<32x16xf32>
      %45 = arith.mulf %42, %44 : vector<32x16xf32>
      %c0_21 = arith.constant 0 : index
      %c0_22 = arith.constant 0 : index
      %46 = vector.load %arg7[%c0_21, %c0_22] : memref<1x16xf32, #tpu.memory_space<vmem>>, vector<1x16xf32>
      %47 = vector.broadcast %46 : vector<1x16xf32> to vector<32x16xf32>
      %48 = arith.addf %45, %47 : vector<32x16xf32>
      %cst_23 = arith.constant 0.000000e+00 : f32
      %49 = vector.broadcast %cst_23 : f32 to vector<32x16xf32>
      %50 = arith.cmpf ogt, %48, %49 : vector<32x16xf32>
      %cst_24 = arith.constant 0.00999999977 : f32
      %51 = vector.broadcast %cst_24 : f32 to vector<32x16xf32>
      %52 = arith.mulf %51, %48 : vector<32x16xf32>
      %53 = arith.select %50, %48, %52 : vector<32x16xi1>, vector<32x16xf32>
      %c0_25 = arith.constant 0 : index
      %c0_26 = arith.constant 0 : index
      %54 = vector.load %arg8[%c0_25, %c0_26] : memref<32x16xf32, #tpu.memory_space<vmem>>, vector<32x16xf32>
      tpu.vector_store %arg8[%c0_25, %c0_26], %53 {strides = array<i32>} : memref<32x16xf32, #tpu.memory_space<vmem>>, vector<32x16xf32>,
    } else {
    }
    return
  }
  func.func @transform_0(%arg0: i32, %arg1: i32) -> (i32, i32) {
    %c2_i32 = arith.constant 2 : i32
    %0 = arith.cmpi slt, %arg0, %c2_i32 : i32
    %c2_i32_0 = arith.constant 2 : i32
    %1 = arith.select %0, %arg1, %c2_i32_0 : i32
    %c0_i32 = arith.constant 0 : i32
    %c0_i32_1 = arith.constant 0 : i32
    return %1, %c0_i32 : i32, i32
  }
  func.func @transform_1(%arg0: i32, %arg1: i32) -> (i32, i32) {
    %c0_i32 = arith.constant 0 : i32
    %c0_i32_0 = arith.constant 0 : i32
    %c0_i32_1 = arith.constant 0 : i32
    return %c0_i32, %c0_i32_0 : i32, i32
  }
  func.func @transform_2(%arg0: i32, %arg1: i32) -> (i32, i32) {
    %c0_i32 = arith.constant 0 : i32
    %c0_i32_0 = arith.constant 0 : i32
    %c0_i32_1 = arith.constant 0 : i32
    return %c0_i32, %c0_i32_0 : i32, i32
  }
  func.func @transform_3(%arg0: i32, %arg1: i32) -> (i32, i32) {
    %c0_i32 = arith.constant 0 : i32
    %c0_i32_0 = arith.constant 0 : i32
    %c0_i32_1 = arith.constant 0 : i32
    return %c0_i32, %c0_i32_0 : i32, i32
  }
  func.func @transform_4(%arg0: i32, %arg1: i32) -> (i32, i32) {
    %c0_i32 = arith.constant 0 : i32
    %c0_i32_0 = arith.constant 0 : i32
    %c0_i32_1 = arith.constant 0 : i32
    return %c0_i32, %c0_i32_0 : i32, i32
  }
  func.func @transform_5(%arg0: i32, %arg1: i32) -> (i32, i32) {
    %c0_i32 = arith.constant 0 : i32
    %c0_i32_0 = arith.constant 0 : i32
    %c0_i32_1 = arith.constant 0 : i32
    return %c0_i32, %c0_i32_0 : i32, i32
  }
  func.func @transform_6(%arg0: i32, %arg1: i32) -> (i32, i32) {
    %c3_i32 = arith.constant 3 : i32
    %0 = arith.cmpi eq, %arg0, %c3_i32 : i32
    %c0_i32 = arith.constant 0 : i32
    %1 = arith.select %0, %arg1, %c0_i32 : i32
    %c0_i32_0 = arith.constant 0 : i32
    %c0_i32_1 = arith.constant 0 : i32
    return %1, %c0_i32_0 : i32, i32
  }
}

</mosaic_0001>

<bundles_post_ra>
// kernel: tpu_custom_call.1
= control target key start
LH: loop header
LB: loop body
LE: loop exit
PB: predicated region body
PF: predicated region fallthrough
CT: control target
= control target key end

     0   :  { %s1239_s21 = smov 0   ;;  %s1241_s22 = smov 0   ;;  %s1376_s0 = inlined_call_operand.vmem [shape: bf16[96,96], index: 0, kind: input, shape index: {}]   ;;  %s1377_s1 = inlined_call_operand.vmem [shape: bf16[96,8], index: 1, kind: input, shape index: {}]   ;;  %s1378_s2 = inlined_call_operand.vmem [shape: bf16[24,16], index: 2, kind: input, shape index: {}]   ;;  %s1379_s3 = inlined_call_operand.vmem [shape: f32[1,16], index: 3, kind: input, shape index: {}]   ;;  %s1380_s4 = inlined_call_operand.vmem [shape: f32[1,16], index: 4, kind: input, shape index: {}]   ;;  %s1381_s5 = inlined_call_operand.vmem [shape: f32[1,16], index: 5, kind: input, shape index: {}]   ;;  %s1382_s6 = inlined_call_operand.vmem [shape: f32[96,16], index: 6, kind: output, shape index: {}]  }
   0x1   :  { %s1243_s23 = smov 0   ;;  %s1245_s24 = smov 0  }
   0x2   :  { %s1247_s25 = smov 0  }
   0x3 LB: > { %s25_s26 = sadd.s32 1, %s1190_s23  ;;  %s28_s27 = sadd.s32 1, %s1194_s24  ;;  %s1198_s25 = sphi %s1247_s25, %s16_s25   ;;  %s1194_s24 = sphi %s1245_s24, %s1386_s24   ;;  %s1190_s23 = sphi %s1243_s23, %s1385_s23   ;;  %s1186_s22 = sphi %s1241_s22, %s1384_s22   ;;  %s1182_s21 = sphi %s1239_s21, %s1383_s21  }
   0x4   : > { %p26_p0 = scmp.ge.s32.totalorder %s25_s26, 3  ;;  %p984_p1 = scmp.ge.s32.totalorder %s1198_s25, 1 }
   0x5   : > { %p237_p2 = scmp.lt.s32.totalorder %s1198_s25, 13 }
   0x6   : > { %s1388_s26 = smov (%p26_p0, %s25_s26), 0  ;;  %s1390_s27 = smov (!%p26_p0, %s28_s27), %s1194_s24 }
   0x7   : > { %p238_p3 = pnand %p984_p1, %p237_p2  ;;  %p30_p4 = scmp.ge.s32.totalorder %s1390_s27, 4 }
   0x8   : > { %p271_p5 = scmp.lt.s32.totalorder (!%p238_p3), %s1186_s22, 2  ;;  %p281_p6 = scmp.eq.s32.totalorder (!%p238_p3), %s1186_s22, 3 }
   0x9   : > { %s1392_s27 = smov (%p30_p4, %s1390_s27), 0  ;;  %241 = sbr.rel (%p238_p3) target bundleno = 1362 (0x552), region = 44 }
   0xa   : > { %s1273_s28 = sshll.u32 (!%p238_p3), %s1182_s21, 5  ;;  %p293_p7 = scmp.eq.s32.totalorder (!%p238_p3), %s1186_s22, 0 }
   0xb   : > { %p294_p8 = scmp.eq.s32.totalorder (!%p238_p3), %s1182_s21, 0 }
   0xd   : > { %p295_p11 = pnand (!%p238_p3), %p294_p8, %p293_p7 }
  0x10   : > { %s272_s29 = scalar_select %p271_p5, %s1182_s21, 2 }
  0x11   : > { %s282_s30 = scalar_select %p281_p6, %s1182_s21, 0 }
  0x12   : > { %s985_s7 = sshll.u32 %s272_s29, 2  ;;  %298 = sbr.rel (%p295_p11) target bundleno = 25 (0x19), region = 48  ;;  %v1144_v0 = vld [vmem:[%s1377_s1] sm:$0xff] (!%p295_p11)   ;;  %vm347_vm0 = vcmask (!%p295_p11), 64512   ;;  %v1145_v1 = vld [vmem:[%s1377_s1 + $0x8] sm:$0xff] (!%p295_p11)   ;;  %vm354_vm1 = vcmask (!%p295_p11), 122880  }
  0x13   : > { %p274_p9 = scmp.lt.s32.totalorder %s985_s7, 11  ;;  %s987_s8 = sshll.u32 %s282_s30, 2  ;;  %348 = vst.msk [vmem:[#allocation2] sm:$0xff] (!%p295_p11), %vm347_vm0, %v1144_v0  ;;  %v1146_v2 = vld [vmem:[%s1377_s1 + $0x10] sm:$0xff] (!%p295_p11)   ;;  %349 = vst.msk [vmem:[#allocation2 + $0x8] sm:$0xff] (!%p295_p11), %vm347_vm0, %v1145_v1  ;;  %v1147_v3 = vld [vmem:[%s1377_s1 + $0x18] sm:$0xff] (!%p295_p11)  }
  0x14   : > { %p284_p10 = scmp.lt.s32.totalorder %s987_s8, 11  ;;  %v1200_v4 = vmov (!%p295_p11), 0.0   ;;  %350 = vst.msk [vmem:[#allocation2 + $0x10] sm:$0xff] (!%p295_p11), %vm347_vm0, %v1146_v2  ;;  %v1148_v5 = vld [vmem:[%s1377_s1 + $0x20] sm:$0xff] (!%p295_p11)   ;;  %351 = vst.msk [vmem:[#allocation2 + $0x18] sm:$0xff] (!%p295_p11), %vm347_vm0, %v1147_v3  ;;  %v1149_v6 = vld [vmem:[%s1377_s1 + $0x28] sm:$0xff] (!%p295_p11)  }
  0x15   : > { %s1394_s7 = smov (!%p274_p9, %s985_s7), 11  ;;  %355 = vst.msk [vmem:[#allocation3] sm:$0x1] (!%p295_p11), %vm354_vm1, %v1200_v4  ;;  %356 = vst.msk [vmem:[#allocation4] sm:$0x1] (!%p295_p11), %vm354_vm1, %v1200_v4 }
  0x16   : > { %s1396_s8 = smov (!%p284_p10, %s987_s8), 11  ;;  %s986_s9 = sshll.u32 %s1394_s7, 2  ;;  %352 = vst.msk [vmem:[#allocation2 + $0x20] sm:$0xff] (!%p295_p11), %vm347_vm0, %v1148_v5  ;;  %353 = vst.msk [vmem:[#allocation2 + $0x28] sm:$0xff] (!%p295_p11), %vm347_vm0, %v1149_v6 }
  0x17   : > { %s1279_s12 = scalar_lea.vmem %s1376_s0, %s986_s9  ;;  %s988_s13 = sshll.u32 %s1396_s8, 3 }
  0x18   : > { %s1284_s16 = scalar_lea.vmem %s1382_s6, %s988_s13 }
  0x19 PF: > { %p996_p12 = scmp.ne.s32.totalorder %s1186_s22, 0 }
  0x1a   : > { %v360_v7 = vld [vmem:[#allocation2] sm:$0xff] (!%p996_p12)  ;;  %v361_v8 = vld [vmem:[#allocation2 + $0x8] sm:$0xff] (!%p996_p12)  ;;  %vm380_vm2 = vcmask (!%p996_p12), 785408   ;;  %s1201_s13 = smov (!%p996_p12), 8   ;;  %s446_s14 = sshra.s32 (!%p996_p12), %s1273_s28, 4  ;;  %vm450_vm3 = vcmask (!%p996_p12), 130112  }
  0x1b   : > { %359 = sbr.rel (%p996_p12) target bundleno = 388 (0x184), region = 52  ;;  %1050 = vmatprep.subr.bf16.mxu0 (!%p996_p12), %v360_v7  ;;  %v1150_v9 = vld [vmem:[%s1279_s12] sm:$0xff] (!%p996_p12)   ;;  %v362_v10 = vld [vmem:[#allocation2 + $0x10] sm:$0xff] (!%p996_p12)  ;;  %v363_v11 = vld [vmem:[#allocation2 + $0x18] sm:$0xff] (!%p996_p12)  ;;  %s1001_s15 = sshll.u32 (!%p996_p12), %s446_s14, 3 }
  0x1c   : > { %1051 = vmatpush3.bf16.msra.mxu0 (!%p996_p12), %v360_v7  ;;  %1062 = vmatprep.mubr.msk.bf16.mxu0 (!%p996_p12), %vm380_vm2, %v1150_v9  ;;  %v1151_v14 = vld [vmem:[%s1279_s12 + $0x8] sm:$0xff] (!%p996_p12)   ;;  %s449_s17 = scalar_lea.vmem (!%p996_p12), [#allocation2], %s1001_s15 }
  0x1d   : > { %1052 = vmatprep.subr.bf16.mxu0 (!%p996_p12), %v361_v8  ;;  %v364_v12 = vld [vmem:[#allocation2 + $0x20] sm:$0xff] (!%p996_p12)  ;;  %v365_v13 = vld [vmem:[#allocation2 + $0x28] sm:$0xff] (!%p996_p12) }
  0x20   : > { %1053 = vmatpush3.bf16.msra.mxu0 (!%p996_p12), %v361_v8 }
  0x21   : > { %1054 = vmatprep.subr.bf16.mxu0 (!%p996_p12), %v362_v10 }
  0x24   : > { %1055 = vmatpush3.bf16.msra.mxu0 %v362_v10 }
  0x25   : > { %1056 = vmatprep.subr.bf16.mxu0 %v363_v11 }
  0x28   : > { %1057 = vmatpush3.bf16.msra.mxu0 %v363_v11 }
  0x29   : > { %1058 = vmatprep.subr.bf16.mxu0 %v364_v12 }
  0x2c   : > { %1059 = vmatpush3.bf16.msra.mxu0 %v364_v12 }
  0x2d   : > { %1060 = vmatprep.subr.bf16.mxu0 %v365_v13 }
  0x30   : > { %1061 = vmatpush3.bf16.msra.mxu0 %v365_v13 }
  0x33   : > { %1063 = vmatmul.mubr.msk.bf16.vlgmr.msra.gmra.mrb[0].mxu0 %vm380_vm2, %v1151_v14 }
 0x106   : > { %v1064_v15 = vpop.f32.mrb[0].mxu0 }
 0x107   : > { %v421_v16 = vpop.f32.mrb[1].mxu0 }
 0x108   : > { %v1065_v17 = vpop.f32.mrb[2].mxu0 }
 0x109   : > { %v437_v18 = vpack.c.bf16 %v1065_v17, %v1064_v15  ;;  %v424_v19 = vpop.f32.mrb[3].mxu0 }
 0x10a   : > { %v436_v20 = vpack.c.bf16 %v424_v19, %v421_v16 }
 0x10c   : > { %440 = vrot.lane.b32.xlu0 %v436_v20, %s1201_s13 }
 0x110   : > { %442 = vrot.lane.b32.xlu0 %v437_v18, %s1201_s13 }
 0x17e   : > { %v441_v21 = vpop.permute.xlu0 %440 }
 0x17f   : > { %451 = vst.msk [vmem:[%s449_s17] sm:$0xff] %vm450_vm3, %v441_v21 }
 0x182   : > { %v443_v22 = vpop.permute.xlu0 %442 }
 0x183   : > { %452 = vst.msk [vmem:[%s449_s17 + $0x8] sm:$0xff] %vm450_vm3, %v443_v22 }
 0x184 PF: > { %p1002_p13 = scmp.ne.s32.totalorder %s1186_s22, 1 }
 0x185   : > { %s1202_s18 = smov (!%p1002_p13), 120   ;;  %v1152_v29 = vld [vmem:[%s1279_s12] sm:$0xff] (!%p1002_p13)   ;;  %vm501_vm4 = vcmask (!%p1002_p13), 785408   ;;  %v1153_v36 = vld [vmem:[%s1279_s12 + $0x8] sm:$0xff] (!%p1002_p13)   ;;  %s557_s19 = sshra.s32 (!%p1002_p13), %s1273_s28, 4  ;;  %vm585_vm5 = vcmask (!%p1002_p13), 195712  }
 0x186   : > { %456 = sbr.rel (%p1002_p13) target bundleno = 871 (0x367), region = 56  ;;  %1078 = vmatprep.mubr.msk.bf16.mxu0 (!%p1002_p13), %vm501_vm4, %v1152_v29  ;;  %s1007_s20 = sshll.u32 (!%p1002_p13), %s557_s19, 3 }
 0x187   : > { %s560_s21 = scalar_lea.vmem (!%p1002_p13), [#allocation2], %s1007_s20  ;;  %s1203_s12 = smov (!%p1002_p13), 16  }
 0x18a   : > { %v457_v23 = vld [vmem:[#allocation2] sm:$0xff] (!%p1002_p13)  ;;  %v459_v24 = vld [vmem:[#allocation2 + $0x10] sm:$0xff] (!%p1002_p13)  ;;  %v458_v25 = vld [vmem:[#allocation2 + $0x8] sm:$0xff] (!%p1002_p13) }
 0x18b   : > { %483 = vrot.lane.b32.xlu0 (!%p1002_p13), %v457_v23, %s1202_s18  ;;  %487 = vrot.lane.b32.xlu1 (!%p1002_p13), %v459_v24, %s1202_s18  ;;  %v460_v26 = vld [vmem:[#allocation2 + $0x18] sm:$0xff] (!%p1002_p13)  ;;  %v461_v27 = vld [vmem:[#allocation2 + $0x20] sm:$0xff] (!%p1002_p13)  ;;  %v462_v28 = vld [vmem:[#allocation2 + $0x28] sm:$0xff] (!%p1002_p13) }
 0x18c   : > { %v562_v37 = vld [vmem:[%s560_s21 + $0x8] sm:$0xff] (!%p1002_p13)  ;;  %v561_v38 = vld [vmem:[%s560_s21] sm:$0xff] (!%p1002_p13) }
 0x18d   : > { %v569_v41 = vunpack.c.l.bf16 %v562_v37  ;;  %v570_v43 = vunpack.c.h.bf16 %v562_v37  ;;  %v567_v45 = vunpack.c.l.bf16 %v561_v38  ;;  %v568_v47 = vunpack.c.h.bf16 %v561_v38 }
 0x18f   : > { %485 = vrot.lane.b32.xlu0 %v458_v25, %s1202_s18  ;;  %489 = vrot.lane.b32.xlu1 %v460_v26, %s1202_s18 }
 0x193   : > { %491 = vrot.lane.b32.xlu0 %v461_v27, %s1202_s18  ;;  %493 = vrot.lane.b32.xlu1 %v462_v28, %s1202_s18 }
 0x1fd   : > { %v484_v30 = vpop.permute.xlu0 %483  ;;  %v488_v31 = vpop.permute.xlu1 %487 }
 0x1fe   : > { %1066 = vmatprep.subr.bf16.mxu0 %v484_v30 }
 0x1ff   : > { %1067 = vmatpush3.bf16.msra.mxu0 %v484_v30 }
 0x201   : > { %v486_v32 = vpop.permute.xlu0 %485  ;;  %v490_v33 = vpop.permute.xlu1 %489 }
 0x202   : > { %1068 = vmatprep.subr.bf16.mxu0 %v486_v32 }
 0x203   : > { %1069 = vmatpush3.bf16.msra.mxu0 %v486_v32 }
 0x204   : > { %1070 = vmatprep.subr.bf16.mxu0 %v488_v31 }
 0x205   : > { %v492_v34 = vpop.permute.xlu0 %491  ;;  %v494_v35 = vpop.permute.xlu1 %493 }
 0x207   : > { %1071 = vmatpush3.bf16.msra.mxu0 %v488_v31 }
 0x208   : > { %1072 = vmatprep.subr.bf16.mxu0 %v490_v33 }
 0x20b   : > { %1073 = vmatpush3.bf16.msra.mxu0 %v490_v33 }
 0x20c   : > { %1074 = vmatprep.subr.bf16.mxu0 %v492_v34 }
 0x20f   : > { %1075 = vmatpush3.bf16.msra.mxu0 %v492_v34 }
 0x210   : > { %1076 = vmatprep.subr.bf16.mxu0 %v494_v35 }
 0x213   : > { %1077 = vmatpush3.bf16.msra.mxu0 %v494_v35 }
 0x216   : > { %1079 = vmatmul.mubr.msk.bf16.vlgmr.msra.gmra.mrb[0].mxu0 %vm501_vm4, %v1153_v36 }
 0x2e9   : > { %v1080_v39 = vpop.f32.mrb[0].mxu0 }
 0x2ea   : > { %v565_v40 = vmul.f32 2.0, %v1080_v39  ;;  %v542_v42 = vpop.f32.mrb[1].mxu0 }
 0x2eb   : > { %v563_v44 = vmul.f32 2.0, %v542_v42  ;;  %v1081_v46 = vpop.f32.mrb[2].mxu0 }
 0x2ec   : > { %v566_v48 = vmul.f32 2.0, %v1081_v46  ;;  %v545_v49 = vpop.f32.mrb[3].mxu0  ;;  %v573_v51 = vsub.f32 %v565_v40, %v569_v41 }
 0x2ed   : > { %v564_v50 = vmul.f32 2.0, %v545_v49  ;;  %v571_v53 = vsub.f32 %v563_v44, %v567_v45 }
 0x2ee   : > { %v574_v52 = vsub.f32 %v566_v48, %v570_v43 }
 0x2ef   : > { %v572_v54 = vsub.f32 %v564_v50, %v568_v47 }
 0x2f0   : > { %v576_v55 = vpack.c.bf16 %v574_v52, %v573_v51 }
 0x2f1   : > { %v575_v56 = vpack.c.bf16 %v572_v54, %v571_v53 }
 0x2f2   : > { %581 = vrot.lane.b32.xlu1 %v576_v55, %s1203_s12 }
 0x2f3   : > { %579 = vrot.lane.b32.xlu0 %v575_v56, %s1203_s12 }
 0x364   : > { %v582_v57 = vpop.permute.xlu1 %581 }
 0x365   : > { %587 = vst.msk [vmem:[%s560_s21 + $0x8] sm:$0xff] %vm585_vm5, %v582_v57  ;;  %v580_v58 = vpop.permute.xlu0 %579 }
 0x366   : > { %586 = vst.msk [vmem:[%s560_s21] sm:$0xff] %vm585_vm5, %v580_v58 }
 0x367 PF: > { %p1008_p0 = scmp.ne.s32.totalorder %s1186_s22, 2 }
 0x368   : > { %v1154_v59 = vld [vmem:[%s1378_s2] sm:$0xff] (!%p1008_p0)   ;;  %v1155_v60 = vld [vmem:[%s1378_s2 + $0x8] ss:$0 sps:$4 sm:$0xff] (!%p1008_p0)   ;;  %vm624_vm6 = vcmask (!%p1008_p0), 1043456   ;;  %s592_s9 = sshra.s32 (!%p1008_p0), %s1273_s28, 4  ;;  %vm617_vm7 = vcmask (!%p1008_p0), 195584   ;;  %v677_v0 = vlaneseq (!%p1008_p0)  ;;  %v682_v3 = vstv (!%p1008_p0), %s1273_s28 }
 0x369   : > { %591 = sbr.rel (%p1008_p0) target bundleno = 1123 (0x463), region = 60  ;;  %1082 = vmatprep.subr.bf16.mxu0 (!%p1008_p0), %v1154_v59  ;;  %s1009_s10 = sshll.u32 (!%p1008_p0), %s592_s9, 3  ;;  %v626_v61 = vsel (!%p1008_p0), %vm624_vm6, %v1155_v60, 0  ;;  %v1010_v8 = vld [vmem:[%s1379_s3] ss:$0 sm:$0xff] (!%p1008_p0)  ;;  %vm704_vm12 = vcmask (!%p1008_p0), 130048  }
 0x36a   : > { %1083 = vmatpush3.bf16.msra.mxu0 (!%p1008_p0), %v1154_v59  ;;  %s595_s11 = scalar_lea.vmem (!%p1008_p0), [#allocation2], %s1009_s10  ;;  %v678_v1 = vshrl.u32 (!%p1008_p0), %v677_v0, 7  ;;  %v703_v50 = vld [vmem:[#allocation3] sm:$0x1] (!%p1008_p0)  ;;  %vm719_vm13 = vcmask (!%p1008_p0), 122880  }
 0x36b   : > { %1098 = vmatprep.subr.msk.bf16.mxu0 (!%p1008_p0), %vm624_vm6, %v1155_v60  ;;  %v721_v53 = vld [vmem:[#allocation4] sm:$0x1] (!%p1008_p0) }
 0x36c   : > { %v680_v2 = vadd.s32 (!%p1008_p0), 16, %v678_v1  ;;  %v681_v4 = vadd.s32 (!%p1008_p0), 24, %v678_v1  ;;  %v679_v5 = vadd.s32 (!%p1008_p0), 8, %v678_v1  ;;  %v683_v7 = vadd.s32 (!%p1008_p0), %v682_v3, %v678_v1 }
 0x36d   : > { %v596_v62 = vld [vmem:[%s595_s11] sm:$0xff] (!%p1008_p0)  ;;  %v597_v63 = vld [vmem:[%s595_s11 + $0x8] sm:$0xff] (!%p1008_p0) }
 0x36e   : > { %1086 = vmatprep.mubr.msk.bf16.mxu0 (!%p1008_p0), %vm617_vm7, %v596_v62  ;;  %1085 = vmatpush3.bf16.msra.mxu0 (!%p1008_p0), %v626_v61  ;;  %v685_v6 = vadd.s32 (!%p1008_p0), %v682_v3, %v680_v2  ;;  %v686_v9 = vadd.s32 (!%p1008_p0), %v682_v3, %v681_v4  ;;  %v684_v10 = vadd.s32 (!%p1008_p0), %v682_v3, %v679_v5  ;;  %vm687_vm9 = vcmp.lt.s32.totalorder (!%p1008_p0), %v683_v7, 80 }
 0x370   : > { %vm689_vm8 = vcmp.lt.s32.totalorder %v685_v6, 80  ;;  %vm690_vm10 = vcmp.lt.s32.totalorder %v686_v9, 80  ;;  %vm688_vm11 = vcmp.lt.s32.totalorder %v684_v10, 80 }
 0x371   : > { %1087 = vmatmul.mubr.msk.bf16.vlgmr.msra.gmra.mrb[0].mxu0 %vm617_vm7, %v597_v63 }
 0x444   : > { %v1088_v11 = vpop.f32.mrb[0].mxu0 }
 0x445   : > { %v671_v12 = vadd.f32 %v1088_v11, %v1010_v8  ;;  %v662_v13 = vpop.f32.mrb[1].mxu0 }
 0x446   : > { %v663_v14 = vadd.f32 %v1010_v8, %v662_v13  ;;  %v1089_v15 = vpop.f32.mrb[2].mxu0 }
 0x447   : > { %v674_v16 = vadd.f32 %v1089_v15, %v1010_v8  ;;  %v665_v17 = vpop.f32.mrb[3].mxu0  ;;  %v701_v18 = vsel %vm689_vm8, %v671_v12, 0.0 }
 0x448   : > { %v699_v19 = vsel %vm687_vm9, %v663_v14, 0.0  ;;  %v666_v20 = vadd.f32 %v1010_v8, %v665_v17  ;;  %v724_v24 = vmul.f32 %v701_v18, %v701_v18  ;;  %v708_v29 = vsel %vm704_vm12, %v701_v18, 0.0 }
 0x449   : > { %v722_v21 = vmul.f32 %v699_v19, %v699_v19  ;;  %v702_v22 = vsel %vm690_vm10, %v674_v16, 0.0  ;;  %v705_v25 = vsel %vm704_vm12, %v699_v19, 0.0 }
 0x44a   : > { %v700_v23 = vsel %vm688_vm11, %v666_v20, 0.0  ;;  %v725_v31 = vmul.f32 %v702_v22, %v702_v22  ;;  %v729_v35 = vsel %vm704_vm12, %v724_v24, 0.0  ;;  %v710_v36 = vsel %vm704_vm12, %v702_v22, 0.0 }
 0x44b   : > { %v706_v26 = vsel %vm704_vm12, %v700_v23, 0.0  ;;  %v723_v27 = vmul.f32 %v700_v23, %v700_v23  ;;  %v726_v30 = vsel %vm704_vm12, %v722_v21, 0.0 }
 0x44c   : > { %v707_v28 = vadd.f32 %v706_v26, %v705_v25  ;;  %v731_v39 = vsel %vm704_vm12, %v725_v31, 0.0 }
 0x44d   : > { %v727_v32 = vsel %vm704_vm12, %v723_v27, 0.0 }
 0x44e   : > { %v709_v33 = vadd.f32 %v708_v29, %v707_v28  ;;  %v728_v34 = vadd.f32 %v727_v32, %v726_v30 }
 0x450   : > { %v711_v37 = vadd.f32 %v710_v36, %v709_v33  ;;  %v730_v38 = vadd.f32 %v729_v35, %v728_v34 }
 0x452   : > { %v712_v40 = vrot.slane %v711_v37, 4  ;;  %v732_v41 = vadd.f32 %v731_v39, %v730_v38 }
 0x454   : > { %v713_v42 = vadd.f32 %v712_v40, %v711_v37  ;;  %v733_v43 = vrot.slane %v732_v41, 4 }
 0x456   : > { %v714_v44 = vrot.slane %v713_v42, 2  ;;  %v734_v45 = vadd.f32 %v733_v43, %v732_v41 }
 0x458   : > { %v715_v46 = vadd.f32 %v714_v44, %v713_v42  ;;  %v735_v47 = vrot.slane %v734_v45, 2 }
 0x45a   : > { %v716_v48 = vrot.slane %v715_v46, 1  ;;  %v736_v49 = vadd.f32 %v735_v47, %v734_v45 }
 0x45c   : > { %v717_v51 = vadd.f32 %v716_v48, %v715_v46  ;;  %v737_v52 = vrot.slane %v736_v49, 1 }
 0x45e   : > { %v718_v54 = vadd.f32 %v717_v51, %v703_v50  ;;  %v738_v55 = vadd.f32 %v737_v52, %v736_v49 }
 0x460   : > { %720 = vst.msk [vmem:[#allocation3] sm:$0x1] %vm719_vm13, %v718_v54  ;;  %v739_v56 = vadd.f32 %v738_v55, %v721_v53 }
 0x462   : > { %740 = vst.msk [vmem:[#allocation4] sm:$0x1] %vm719_vm13, %v739_v56 }
 0x463 PF: > { %p1015_p1 = scmp.ne.s32.totalorder %s1186_s22, 3 }
 0x464   : > { %v1156_v57 = vld [vmem:[%s1378_s2] sm:$0xff] (!%p1015_p1)   ;;  %v1157_v58 = vld [vmem:[%s1378_s2 + $0x8] ss:$0 sps:$4 sm:$0xff] (!%p1015_p1)   ;;  %vm784_vm14 = vcmask (!%p1015_p1), 1043456   ;;  %s752_s20 = sshra.s32 (!%p1015_p1), %s1273_s28, 4  ;;  %vm777_vm15 = vcmask (!%p1015_p1), 195584   ;;  %v838_v6 = vlaneseq (!%p1015_p1) }
 0x465   : > { %744 = sbr.rel (%p1015_p1) target bundleno = 1362 (0x552), region = 64  ;;  %1090 = vmatprep.subr.bf16.mxu0 (!%p1015_p1), %v1156_v57  ;;  %s1016_s21 = sshll.u32 (!%p1015_p1), %s752_s20, 3  ;;  %v786_v59 = vsel (!%p1015_p1), %vm784_vm14, %v1157_v58, 0  ;;  %v1017_v10 = vld [vmem:[%s1379_s3] ss:$0 sm:$0xff] (!%p1015_p1)  ;;  %vm893_vm1 = vcmask (!%p1015_p1), 130048  }
 0x466   : > { %1091 = vmatpush3.bf16.msra.mxu0 (!%p1015_p1), %v1156_v57  ;;  %s755_s12 = scalar_lea.vmem (!%p1015_p1), [#allocation2], %s1016_s21  ;;  %v839_v7 = vshrl.u32 (!%p1015_p1), %v838_v6, 7  ;;  %v1022_v21 = vld [vmem:[%s1380_s4] ss:$0 sm:$0xff] (!%p1015_p1) }
 0x467   : > { %1099 = vmatprep.subr.msk.bf16.mxu0 (!%p1015_p1), %vm784_vm14, %v1157_v58  ;;  %v756_v60 = vld [vmem:[%s755_s12] sm:$0xff] (!%p1015_p1)  ;;  %v757_v61 = vld [vmem:[%s755_s12 + $0x8] sm:$0xff] (!%p1015_p1)  ;;  %v745_v62 = vld [vmem:[#allocation3] sm:$0x1] (!%p1015_p1) }
 0x468   : > { %1094 = vmatprep.mubr.msk.bf16.mxu0 (!%p1015_p1), %vm777_vm15, %v756_v60  ;;  %v746_v63 = vmul.f32 (!%p1015_p1), 0.0125, %v745_v62  ;;  %v840_v8 = vsub.s32 (!%p1015_p1), 0, %v839_v7  ;;  %v1023_v26 = vld [vmem:[%s1381_s5] ss:$0 sm:$0xff] (!%p1015_p1) }
 0x469   : > { %v747_v0 = vld [vmem:[#allocation4] sm:$0x1] (!%p1015_p1) }
 0x46a   : > { %1093 = vmatpush3.bf16.msra.mxu0 (!%p1015_p1), %v786_v59  ;;  %v748_v1 = vmul.f32 (!%p1015_p1), 0.0125, %v747_v0  ;;  %v749_v2 = vmul.f32 (!%p1015_p1), %v746_v63, %v746_v63  ;;  %v841_v11 = vrot.slane (!%p1015_p1), %v746_v63, %v840_v8 }
 0x46c   : > { %v750_v3 = vsub.f32 %v748_v1, %v749_v2 }
 0x46d   : > { %1095 = vmatmul.mubr.msk.bf16.vlgmr.msra.gmra.mrb[0].mxu0 %vm777_vm15, %v757_v61 }
 0x46e   : > { %v751_v4 = vmax.f32 %v750_v3, 0.0 }
 0x470   : > { %v847_v5 = vadd.f32 1e-05, %v751_v4 }
 0x472   : > { %1158 = vrsqrt.f32 %v847_v5 }
 0x47c   : > { %v1159_v9 = vpop.eup %1158 }
 0x47d   : > { %v853_v14 = vrot.slane %v1159_v9, %v840_v8 }
 0x540   : > { %v1096_v12 = vpop.f32.mrb[0].mxu0 }
 0x541   : > { %v831_v13 = vadd.f32 %v1096_v12, %v1017_v10  ;;  %v822_v15 = vpop.f32.mrb[1].mxu0 }
 0x542   : > { %v823_v16 = vadd.f32 %v1017_v10, %v822_v15  ;;  %v1097_v17 = vpop.f32.mrb[2].mxu0 }
 0x543   : > { %v845_v18 = vsub.f32 %v831_v13, %v841_v11  ;;  %v834_v19 = vadd.f32 %v1097_v17, %v1017_v10  ;;  %v825_v20 = vpop.f32.mrb[3].mxu0 }
 0x544   : > { %v843_v22 = vsub.f32 %v823_v16, %v841_v11  ;;  %v826_v23 = vadd.f32 %v1017_v10, %v825_v20 }
 0x545   : > { %v857_v24 = vmul.f32 %v853_v14, %v845_v18  ;;  %v846_v25 = vsub.f32 %v834_v19, %v841_v11 }
 0x546   : > { %v855_v27 = vmul.f32 %v853_v14, %v843_v22  ;;  %v844_v28 = vsub.f32 %v826_v23, %v841_v11 }
 0x547   : > { %v868_v29 = vmul.f32 %v1022_v21, %v857_v24  ;;  %v858_v30 = vmul.f32 %v853_v14, %v846_v25 }
 0x548   : > { %v866_v31 = vmul.f32 %v1022_v21, %v855_v27  ;;  %v856_v32 = vmul.f32 %v853_v14, %v844_v28 }
 0x549   : > { %v879_v33 = vadd.f32 %v1023_v26, %v868_v29  ;;  %v869_v34 = vmul.f32 %v1022_v21, %v858_v30 }
 0x54a   : > { %v877_v35 = vadd.f32 %v1023_v26, %v866_v31  ;;  %v867_v36 = vmul.f32 %v1022_v21, %v856_v32 }
 0x54b   : > { %vm883_vm0 = vcmp.gt.f32.partialorder %v879_v33, 0.0  ;;  %v887_v37 = vmul.f32 0.01, %v879_v33  ;;  %v880_v38 = vadd.f32 %v1023_v26, %v869_v34 }
 0x54c   : > { %vm881_vm2 = vcmp.gt.f32.partialorder %v877_v35, 0.0  ;;  %v885_v39 = vmul.f32 0.01, %v877_v35  ;;  %v878_v40 = vadd.f32 %v1023_v26, %v867_v36 }
 0x54d   : > { %v891_v41 = vsel %vm883_vm0, %v879_v33, %v887_v37  ;;  %vm884_vm3 = vcmp.gt.f32.partialorder %v880_v38, 0.0  ;;  %v888_v42 = vmul.f32 0.01, %v880_v38 }
 0x54e   : > { %896 = vst.msk [vmem:[%s1284_s16 + $0x10] sm:$0xff] %vm893_vm1, %v891_v41  ;;  %v889_v43 = vsel %vm881_vm2, %v877_v35, %v885_v39  ;;  %vm882_vm4 = vcmp.gt.f32.partialorder %v878_v40, 0.0  ;;  %v886_v44 = vmul.f32 0.01, %v878_v40 }
 0x54f   : > { %894 = vst.msk [vmem:[%s1284_s16] sm:$0xff] %vm893_vm1, %v889_v43  ;;  %v892_v45 = vsel %vm884_vm3, %v880_v38, %v888_v42 }
 0x550   : > { %897 = vst.msk [vmem:[%s1284_s16 + $0x18] sm:$0xff] %vm893_vm1, %v892_v45  ;;  %v890_v46 = vsel %vm882_vm4, %v878_v40, %v886_v44 }
 0x551   : > { %895 = vst.msk [vmem:[%s1284_s16 + $0x8] sm:$0xff] %vm893_vm1, %v890_v46 }
 0x552 PF: > { %s16_s25 = sadd.s32 1, %s1198_s25   ;;  %s1383_s21 = smov %s1190_s23 }
 0x553   : > { %p13_p2 = scmp.ge.s32.totalorder %s16_s25, 14   ;;  %s1384_s22 = smov %s1194_s24 }
 0x554   : > { %s1385_s23 = smov %s1388_s26  ;;  %s1386_s24 = smov %s1392_s27 }
 0x555   :  { %15 = sbr.rel (!%p13_p2) target bundleno = 3 (0x3), region = 98 }

</bundles_post_ra>
